<compile_context>
chip_gen: v7x
topology: tpu7x:2x2x1
jax: 0.10.0
libtpu: 0.0.40
codegen_flags: <defaults>
</compile_context>

<pallas_src>
import functools
import math

import jax
import jax.numpy as jnp
from jax import lax
from jax.experimental import pallas as pl
from jax.experimental.pallas import tpu as pltpu


# ---------------------------------------------------------------------------
# helpers
# ---------------------------------------------------------------------------

def _pick_tile(dim, target, align):
    """Largest tile <= target that is a multiple of `align` and divides `dim`.
    Falls back to the full dim (always a legal block shape)."""
    t = min(target, (dim // align) * align)
    while t >= align:
        if dim % t == 0:
            return t
        t -= align
    return dim


# ---------------------------------------------------------------------------
# Tiled linear: y = x @ W + b   (bf16 MXU operands, f32 accumulation)
# ---------------------------------------------------------------------------

def _linear_kernel(x_ref, w_ref, b_ref, o_ref, acc_ref):
    k = pl.program_id(2)

    @pl.when(k == 0)
    def _():
        acc_ref[...] = jnp.zeros_like(acc_ref)

    acc_ref[...] += jnp.dot(x_ref[...], w_ref[...],
                            preferred_element_type=jnp.float32)

    @pl.when(k == pl.num_programs(2) - 1)
    def _():
        o_ref[...] = (acc_ref[...] + b_ref[...]).astype(o_ref.dtype)


def linear(x2d, w, b, *, out_dtype=jnp.float32,
           tm_target=512, tn_target=512, tk_target=512):
    """x2d: (M, K) -> (M, N) in out_dtype.  Operands streamed in bf16."""
    M, K = x2d.shape
    N = w.shape[1]
    tm = _pick_tile(M, tm_target, 8)
    tn = _pick_tile(N, tn_target, 128)
    tk = _pick_tile(K, tk_target, 128)

    out_bytes = jnp.dtype(out_dtype).itemsize * M * N
    cost = pl.CostEstimate(
        flops=2 * M * N * K,
        transcendentals=0,
        bytes_accessed=2 * (M * K + K * N) + 4 * N + out_bytes,
    )

    return pl.pallas_call(
        _linear_kernel,
        out_shape=jax.ShapeDtypeStruct((M, N), out_dtype),
        grid_spec=pltpu.PrefetchScalarGridSpec(
            num_scalar_prefetch=0,
            grid=(M // tm, N // tn, K // tk),
            in_specs=[
                pl.BlockSpec((tm, tk), lambda i, j, k: (i, k)),
                pl.BlockSpec((tk, tn), lambda i, j, k: (k, j)),
                pl.BlockSpec((1, tn), lambda i, j, k: (0, j)),
            ],
            out_specs=pl.BlockSpec((tm, tn), lambda i, j, k: (i, j)),
            scratch_shapes=[pltpu.VMEM((tm, tn), jnp.float32)],
        ),
        compiler_params=pltpu.CompilerParams(
            dimension_semantics=("parallel", "parallel", "arbitrary"),
            vmem_limit_bytes=32 * 1024 * 1024,
        ),
        cost_estimate=cost,
    )(x2d.astype(jnp.bfloat16), w.astype(jnp.bfloat16),
      b.reshape(1, N).astype(jnp.float32))


# ---------------------------------------------------------------------------
# Flash attention with additive (FIRE + causal) bias, causal block skip
# ---------------------------------------------------------------------------

def _flash_attn_kernel(q_ref, k_ref, v_ref, b_ref, o_ref,
                       m_sc, l_sc, acc_sc, *, scale, tq, tk):
    qi = pl.program_id(2)
    ki = pl.program_id(3)

    @pl.when(ki == 0)
    def _():
        m_sc[...] = jnp.full_like(m_sc, -jnp.inf)
        l_sc[...] = jnp.zeros_like(l_sc)
        acc_sc[...] = jnp.zeros_like(acc_sc)

    # Skip kv blocks entirely above the causal diagonal.  The clamped
    # index_maps alias those steps onto the last valid block (no new DMA);
    # their masked probabilities would underflow to exactly 0 anyway, so the
    # result is bit-identical.  Safe because kv blocks iterate in ascending
    # order and block 0 (always valid) initializes the running max.
    @pl.when(ki * tk < (qi + 1) * tq)
    def _():
        # Softmax scale folded into the (tq, D) q tile, not the (tq, tk)
        # score tile (tk >> D -> fewer VALU ops in the inner loop).
        q = (q_ref[0, 0].astype(jnp.float32) * scale).astype(jnp.bfloat16)
        k = k_ref[0, 0]                                     # (tk, D) bf16
        # Contract D directly (no K transpose -> XLU stays free).
        s = lax.dot_general(q, k, (((1,), (1,)), ((), ())),
                            preferred_element_type=jnp.float32)  # (tq, tk)
        s = s + b_ref[0].astype(jnp.float32)

        m_prev = m_sc[...]
        m_new = jnp.maximum(m_prev, jnp.max(s, axis=-1, keepdims=True))
        alpha = jnp.exp(m_prev - m_new)                     # f32 (EUP)
        p = jnp.exp(s - m_new)                              # f32 (EUP)
        l_sc[...] = alpha * l_sc[...] + jnp.sum(p, axis=-1, keepdims=True)
        acc_sc[...] = alpha * acc_sc[...] + jnp.dot(
            p.astype(jnp.bfloat16), v_ref[0, 0],
            preferred_element_type=jnp.float32)
        m_sc[...] = m_new

    @pl.when(ki == pl.num_programs(3) - 1)
    def _():
        o_ref[0, 0] = (acc_sc[...] *
                       pl.reciprocal(l_sc[...], approx=True)).astype(o_ref.dtype)


def flash_sdpa(q, k, v, bias, *, tq_target=256, tk_target=512):
    """q, k, v: (B, H, T, D) bf16; bias: (H, T, T) bf16 (batch-independent).

    Returns (B, H, T, D) bf16.
    """
    B, H, T, D = q.shape
    tq = _pick_tile(T, tq_target, 16)    # 16: bf16 sublane packing of bias
    tk = _pick_tile(T, tk_target, 128)
    scale = 1.0 / math.sqrt(D)

    def kv_idx(qi, ki):
        # Clamp to the last kv block that intersects the causal region of qi.
        return jnp.minimum(ki, ((qi + 1) * tq - 1) // tk)

    cost = pl.CostEstimate(
        flops=2 * B * H * T * T * D,           # ~causal half of 4*BH*T^2*D
        transcendentals=B * H * T * T // 2,
        bytes_accessed=2 * (3 * B * H * T * D) + 2 * H * T * T
                       + 2 * B * H * T * D,
    )

    kernel = functools.partial(_flash_attn_kernel, scale=scale, tq=tq, tk=tk)
    return pl.pallas_call(
        kernel,
        out_shape=jax.ShapeDtypeStruct((B, H, T, D), jnp.bfloat16),
        grid_spec=pltpu.PrefetchScalarGridSpec(
            num_scalar_prefetch=0,
            grid=(B, H, T // tq, T // tk),
            in_specs=[
                pl.BlockSpec((1, 1, tq, D),
                             lambda b, h, qi, ki: (b, h, qi, 0)),
                pl.BlockSpec((1, 1, tk, D),
                             lambda b, h, qi, ki: (b, h, kv_idx(qi, ki), 0)),
                pl.BlockSpec((1, 1, tk, D),
                             lambda b, h, qi, ki: (b, h, kv_idx(qi, ki), 0)),
                pl.BlockSpec((1, tq, tk),
                             lambda b, h, qi, ki: (h, qi, kv_idx(qi, ki))),
            ],
            out_specs=pl.BlockSpec((1, 1, tq, D),
                                   lambda b, h, qi, ki: (b, h, qi, 0)),
            scratch_shapes=[
                pltpu.VMEM((tq, 1), jnp.float32),   # running max
                pltpu.VMEM((tq, 1), jnp.float32),   # running denom
                pltpu.VMEM((tq, D), jnp.float32),   # output accumulator
            ],
        ),
        compiler_params=pltpu.CompilerParams(
            dimension_semantics=("parallel", "parallel", "parallel",
                                 "arbitrary"),
            vmem_limit_bytes=32 * 1024 * 1024,
        ),
        cost_estimate=cost,
    )(q, k, v, bias)


# ---------------------------------------------------------------------------
# Module forward
# ---------------------------------------------------------------------------

def causal_self_attention(x, fire_causal_mask, params, n_head):
    """x: (B, T, C); fire_causal_mask: (H, T, T) or (1, H, T, T) additive bias."""
    B, T, C = x.shape
    H = n_head
    D = C // H

    # FIRE bias is batch-independent: stream a single (H, T, T) copy.
    if fire_causal_mask.ndim == 4:
        fire_causal_mask = fire_causal_mask[0]
    bias = fire_causal_mask.astype(jnp.bfloat16)             # (H, T, T)

    # --- c_attn: qkv = x @ Wqkv + bqkv  (bf16 activations out) --------------
    qkv = linear(x.reshape(B * T, C), params["w_attn"], params["b_attn"],
                 out_dtype=jnp.bfloat16)
    qkv = qkv.reshape(B, T, 3 * C)
    q, k, v = jnp.split(qkv, 3, axis=2)                       # (B, T, C) bf16

    def split_heads(t):                                       # -> (B, H, T, D)
        return t.reshape(B, T, H, D).transpose(0, 2, 1, 3)

    # --- flash scaled-dot-product attention (Pallas) ------------------------
    yh = flash_sdpa(split_heads(q), split_heads(k), split_heads(v), bias)

    # --- merge heads, output projection --------------------------------------
    # TODO(synk): head-pair (2*D=128) lane-dense layout to drop these transposes.
    y = yh.transpose(0, 2, 1, 3).reshape(B * T, C)            # bf16
    y = linear(y, params["w_proj"], params["b_proj"], out_dtype=jnp.float32)
    return y.reshape(B, T, C)


# ---------------------------------------------------------------------------
# Pure-JAX f32 reference (for correctness check)
# ---------------------------------------------------------------------------

def reference(x, fire_causal_mask, params, n_head):
    B, T, C = x.shape
    D = C // n_head
    qkv = x @ params["w_attn"] + params["b_attn"]
    q, k, v = jnp.split(qkv, 3, axis=2)

    def sh(t):
        return t.reshape(B, T, n_head, D).transpose(0, 2, 1, 3)

    q, k, v = sh(q), sh(k), sh(v)
    s = jnp.einsum("bhtd,bhsd->bhts", q, k) / math.sqrt(D) + fire_causal_mask
    p = jax.nn.softmax(s, axis=-1)
    y = jnp.einsum("bhts,bhsd->bhtd", p, v)
    y = y.transpose(0, 2, 1, 3).reshape(B, T, C)
    return y @ params["w_proj"] + params["b_proj"]


# ---------------------------------------------------------------------------
# Main
# ---------------------------------------------------------------------------

if __name__ == "__main__":
    B, T, C, H = 2, 8, 32, 4

    key = jax.random.PRNGKey(0)
    k_x, k_wa, k_ba, k_wp, k_bp, k_m = jax.random.split(key, 6)

    x = jax.random.normal(k_x, (B, T, C), dtype=jnp.float32)

    # nn.Linear-shaped params (transposed so kernels compute x @ W + b).
    params_f32 = {
        "w_attn": 0.02 * jax.random.normal(k_wa, (C, 3 * C), dtype=jnp.float32),
        "b_attn": 0.02 * jax.random.normal(k_ba, (3 * C,), dtype=jnp.float32),
        "w_proj": 0.02 * jax.random.normal(k_wp, (C, C), dtype=jnp.float32),
        "b_proj": 0.02 * jax.random.normal(k_bp, (C,), dtype=jnp.float32),
    }
    # Kernel-side params: weights pre-cast to bf16 once (no per-call cast pass).
    params = {
        "w_attn": params_f32["w_attn"].astype(jnp.bfloat16),
        "b_attn": params_f32["b_attn"],
        "w_proj": params_f32["w_proj"].astype(jnp.bfloat16),
        "b_proj": params_f32["b_proj"],
    }

    # FIRE-style learned additive bias (batch-independent) + causal mask.
    rand_bias = 0.1 * jax.random.normal(k_m, (1, H, T, T), dtype=jnp.float32)
    causal = jnp.tril(jnp.ones((T, T), dtype=bool))
    fire_causal_mask = jnp.where(causal[None, None], rand_bias, -1e9)

    y = causal_self_attention(x, fire_causal_mask, params, H)
    y = jax.block_until_ready(y)

    y_ref = reference(x, fire_causal_mask, params_f32, H)
    max_err = float(jnp.max(jnp.abs(y - y_ref)))
    # bf16 MXU operands / bf16 intermediates + approx reciprocal -> loosened
    # tolerance vs the f32 reference.
    assert jnp.allclose(y, y_ref, atol=2e-2, rtol=2e-2), max_err

    print("KERNEL_OK")
</pallas_src>

<mosaic_0001>
module attributes {stable_mosaic.version = 11 : i64} {
  func.func @_linear_kernel(%arg0: i32, %arg1: i32, %arg2: i32, %arg3: memref<16x32xbf16, #tpu.memory_space<vmem>>, %arg4: memref<32x96xbf16, #tpu.memory_space<vmem>>, %arg5: memref<1x96xf32, #tpu.memory_space<vmem>>, %arg6: memref<16x96xbf16, #tpu.memory_space<vmem>>, %arg7: memref<16x96xf32, #tpu.memory_space<vmem>>) attributes {dimension_semantics = [#tpu.dimension_semantics<parallel>, #tpu.dimension_semantics<parallel>, #tpu.dimension_semantics<arbitrary>], iteration_bounds = array<i64: 1, 1, 1>, scalar_prefetch = 0 : i64, scratch_operands = 1 : i64, tpu.core_type = #tpu.core_type<tc>, window_params = [{transform_indices = @transform_0, window_bounds = array<i64: 16, 32>}, {transform_indices = @transform_1, window_bounds = array<i64: 32, 96>}, {transform_indices = @transform_2, window_bounds = array<i64: 1, 96>}, {transform_indices = @transform_3, window_bounds = array<i64: 16, 96>}]} {
    %c0_i32 = arith.constant 0 : i32
    %0 = arith.cmpi eq, %arg2, %c0_i32 : i32
    %1 = arith.extui %0 : i1 to i32
    %c0_i32_0 = arith.constant 0 : i32
    %2 = arith.cmpi ne, %1, %c0_i32_0 : i32
    scf.if %2 {
      %cst_10 = arith.constant 0.000000e+00 : f32
      %12 = vector.broadcast %cst_10 : f32 to vector<16x96xf32>
      %c0_11 = arith.constant 0 : index
      %c0_12 = arith.constant 0 : index
      %13 = vector.load %arg7[%c0_11, %c0_12] : memref<16x96xf32, #tpu.memory_space<vmem>>, vector<16x96xf32>
      tpu.vector_store %arg7[%c0_11, %c0_12], %12 {strides = array<i32>} : memref<16x96xf32, #tpu.memory_space<vmem>>, vector<16x96xf32>,
    } else {
    }
    %c0 = arith.constant 0 : index
    %c0_1 = arith.constant 0 : index
    %3 = vector.load %arg7[%c0, %c0_1] : memref<16x96xf32, #tpu.memory_space<vmem>>, vector<16x96xf32>
    %c0_2 = arith.constant 0 : index
    %c0_3 = arith.constant 0 : index
    %4 = vector.load %arg3[%c0_2, %c0_3] : memref<16x32xbf16, #tpu.memory_space<vmem>>, vector<16x32xbf16>
    %c0_4 = arith.constant 0 : index
    %c0_5 = arith.constant 0 : index
    %5 = vector.load %arg4[%c0_4, %c0_5] : memref<32x96xbf16, #tpu.memory_space<vmem>>, vector<32x96xbf16>
    %cst = arith.constant dense<0.000000e+00> : vector<16x96xf32>
    %6 = tpu.matmul %4, %5, %cst {dimension_numbers = #tpu.dot_dimension_numbers<[1], [0], [0], [1], [0, 0, 1, 1], [], []>} : vector<16x32xbf16>, vector<32x96xbf16>, vector<16x96xf32> -> vector<16x96xf32>
    %7 = arith.addf %3, %6 : vector<16x96xf32>
    %c0_6 = arith.constant 0 : index
    %c0_7 = arith.constant 0 : index
    %8 = vector.load %arg7[%c0_6, %c0_7] : memref<16x96xf32, #tpu.memory_space<vmem>>, vector<16x96xf32>
    tpu.vector_store %arg7[%c0_6, %c0_7], %7 {strides = array<i32>} : memref<16x96xf32, #tpu.memory_space<vmem>>, vector<16x96xf32>,
    %c0_i32_8 = arith.constant 0 : i32
    %9 = arith.cmpi eq, %arg2, %c0_i32_8 : i32
    %10 = arith.extui %9 : i1 to i32
    %c0_i32_9 = arith.constant 0 : i32
    %11 = arith.cmpi ne, %10, %c0_i32_9 : i32
    scf.if %11 {
      %c0_10 = arith.constant 0 : index
      %c0_11 = arith.constant 0 : index
      %12 = vector.load %arg7[%c0_10, %c0_11] : memref<16x96xf32, #tpu.memory_space<vmem>>, vector<16x96xf32>
      %c0_12 = arith.constant 0 : index
      %c0_13 = arith.constant 0 : index
      %13 = vector.load %arg5[%c0_12, %c0_13] : memref<1x96xf32, #tpu.memory_space<vmem>>, vector<1x96xf32>
      %14 = vector.broadcast %13 : vector<1x96xf32> to vector<16x96xf32>
      %15 = arith.addf %12, %14 : vector<16x96xf32>
      %16 = arith.truncf %15 : vector<16x96xf32> to vector<16x96xbf16>
      %c0_14 = arith.constant 0 : index
      %c0_15 = arith.constant 0 : index
      %17 = vector.load %arg6[%c0_14, %c0_15] : memref<16x96xbf16, #tpu.memory_space<vmem>>, vector<16x96xbf16>
      tpu.vector_store %arg6[%c0_14, %c0_15], %16 {strides = array<i32>} : memref<16x96xbf16, #tpu.memory_space<vmem>>, vector<16x96xbf16>,
    } else {
    }
    return
  }
  func.func @transform_0(%arg0: i32, %arg1: i32, %arg2: i32) -> (i32, i32) {
    %c0_i32 = arith.constant 0 : i32
    return %arg0, %arg2 : i32, i32
  }
  func.func @transform_1(%arg0: i32, %arg1: i32, %arg2: i32) -> (i32, i32) {
    %c0_i32 = arith.constant 0 : i32
    return %arg2, %arg1 : i32, i32
  }
  func.func @transform_2(%arg0: i32, %arg1: i32, %arg2: i32) -> (i32, i32) {
    %c0_i32 = arith.constant 0 : i32
    %c0_i32_0 = arith.constant 0 : i32
    return %c0_i32, %arg1 : i32, i32
  }
  func.func @transform_3(%arg0: i32, %arg1: i32, %arg2: i32) -> (i32, i32) {
    %c0_i32 = arith.constant 0 : i32
    return %arg0, %arg1 : i32, i32
  }
}

</mosaic_0001>

<bundles_post_ra>
// kernel: tpu_custom_call.1
= control target key start
LH: loop header
LB: loop body
LE: loop exit
PB: predicated region body
PF: predicated region fallthrough
CT: control target
= control target key end

     0   :  { %8 = vsyncpa [#allocation4], 0  ;;  %s350_s0 = inlined_call_operand.hbm [shape: bf16[16,32], index: 0, kind: input, shape index: {}]   ;;  %s351_s1 = inlined_call_operand.hbm [shape: bf16[32,96], index: 1, kind: input, shape index: {}]   ;;  %s352_s2 = inlined_call_operand.vmem [shape: f32[1,96], index: 2, kind: input, shape index: {}]   ;;  %s353_s3 = inlined_call_operand.hbm [shape: bf16[16,96], index: 3, kind: output, shape index: {}]  }
   0x1   :  { %9 = vsyncpa [#allocation7], 0 }
   0x2   :  { %10 = vsyncpa [#allocation5], 0  ;;  %s271_s12 = smov [#allocation3]   ;;  %s199_s16 = scalar_lea.hbm %s350_s0, 128 }
   0x3   :  { %s16_s13 = sshll.u32 %s271_s12, 4  ;;  %p200_p0 = scmp.ne.s32.totalorder %s350_s0, %s199_s16  ;;  %s17_s13 = int_to_ptr.vmem [resolvable:$true] %s16_s13 }
   0x4   :  { %p203_p1 = scmp.lt.u32.totalorder %s199_s16, %s350_s0 }
   0x6   :  { %p205_p2 = pnand %p203_p1, %p200_p0 }
   0x8   :  { %208 = shalt.err (!%p205_p2)
}
   0x9   :  { %s209_s21 = scalar_lea.vmem %s17_s13, 128  ;;  %p214_p4 = scmp.lt.s32.totalorder %s17_s13, %s17_s13 }
   0xa   :  { %p210_p3 = scmp.ne.s32.totalorder %s17_s13, %s209_s21  ;;  %p215_p5 = scmp.lt.s32.totalorder %s209_s21, %s209_s21 }
   0xc   :  { %p216_p6 = por %p215_p5, %p214_p4 }
   0xe   :  { %p217_p7 = pnand %p216_p6, %p210_p3 }
  0x10   :  { %220 = shalt.err (!%p217_p7)
}
  0x11   :  { %s272_s22 = smov 64   ;;  %s273_s23 = smov 4  }
  0x12   :  { %22 = dma.hbm_to_vmem [thread:$0]  %s350_s0, 128, %s17_s13, [#allocation4], %s272_s22, %s272_s22, %s273_s23  }
  0x13   :  { %s274_s26 = smov [#allocation6]   ;;  %s221_s30 = scalar_lea.hbm %s351_s1, 256 }
  0x14   :  { %s28_s27 = sshll.u32 %s274_s26, 4  ;;  %p222_p8 = scmp.ne.s32.totalorder %s351_s1, %s221_s30  ;;  %s29_s27 = int_to_ptr.vmem [resolvable:$true] %s28_s27 }
  0x15   :  { %p225_p9 = scmp.lt.u32.totalorder %s221_s30, %s351_s1 }
  0x17   :  { %p227_p10 = pnand %p225_p9, %p222_p8 }
  0x19   :  { %230 = shalt.err (!%p227_p10)
}
  0x1a   :  { %s231_s8 = scalar_lea.vmem %s29_s27, 256  ;;  %p236_p12 = scmp.lt.s32.totalorder %s29_s27, %s29_s27 }
  0x1b   :  { %p232_p11 = scmp.ne.s32.totalorder %s29_s27, %s231_s8  ;;  %p237_p13 = scmp.lt.s32.totalorder %s231_s8, %s231_s8 }
  0x1d   :  { %p238_p0 = por %p237_p13, %p236_p12 }
  0x1f   :  { %p239_p1 = pnand %p238_p0, %p232_p11 }
  0x21   :  { %242 = shalt.err (!%p239_p1)
}
  0x22   :  { %34 = dma.hbm_to_vmem [thread:$0]  %s351_s1, 256, %s29_s27, [#allocation7], %s272_s22, %s272_s22, %s273_s23  }
  0x23   :  { %265 = dma.done.wait [#allocation4], 128  }
  0x24   :  { %266 = vsyncadd [#allocation4], 4294967168 }
  0x25   :  { %267 = dma.done.wait [#allocation7], 256  }
  0x26   :  { %268 = vsyncadd [#allocation7], 4294967040  ;;  %vm48_vm0 = vcmask 785408   ;;  %v275_v0 = vmov 0.0   ;;  %vm276_vm1 = vmmov 0   ;;  %v196_v1 = vld [vmem:[#allocation6] sm:$0xff]  }
  0x27   :  { %49 = vst.msk [vmem:[#allocation2] sm:$0xff] %vm48_vm0, %v275_v0  ;;  %50 = vst.msk [vmem:[#allocation2 + $0x8] sm:$0xff] %vm48_vm0, %v275_v0  ;;  %181 = vmatprep.subr.bf16.mxu0 %v275_v0  ;;  %185 = vmatprep.mubr.msk.bf16.mxu0 %vm276_vm1, %v275_v0  ;;  %v197_v2 = vld [vmem:[#allocation6 + $0x8] sm:$0xff]   ;;  %v198_v3 = vld [vmem:[#allocation3] sm:$0xff]   ;;  %vm76_vm2 = vcmask 261120   ;;  %vm148_vm3 = vcmask 781312  }
  0x28   :  { %182 = vmatpush3.bf16.msra.mxu0 %v196_v1  ;;  %v173_v12 = vld [vmem:[%s352_s2] ss:$0 sm:$0xff]  ;;  %s277_s11 = smov [#allocation8]  }
  0x29   :  { %183 = vmatprep.subr.bf16.mxu0 %v275_v0  ;;  %s156_s12 = sshll.u32 %s277_s11, 4  ;;  %s157_s12 = int_to_ptr.vmem [resolvable:$true] %s156_s12 }
  0x2a   :  { %s243_s13 = scalar_lea.vmem %s157_s12, 128  ;;  %p248_p3 = scmp.lt.s32.totalorder %s157_s12, %s157_s12 }
  0x2b   :  { %p244_p2 = scmp.ne.s32.totalorder %s157_s12, %s243_s13  ;;  %p249_p4 = scmp.lt.s32.totalorder %s243_s13, %s243_s13 }
  0x2c   :  { %184 = vmatpush3.bf16.msra.mxu0 %v197_v2 }
  0x2d   :  { %p250_p5 = por %p249_p4, %p248_p3 }
  0x2e   :  { %v51_v4 = vld [vmem:[#allocation2] sm:$0xff]  ;;  %v52_v6 = vld [vmem:[#allocation2 + $0x8] sm:$0xff] }
  0x2f   :  { %186 = vmatmul.mubr.msk.bf16.vlgmr.msra.gmra.mrb[0].mxu0 %vm76_vm2, %v198_v3  ;;  %p251_p6 = pnand %p250_p5, %p244_p2 }
 0x102   :  { %v114_v5 = vpop.f32.mrb[0].mxu0 }
 0x103   :  { %v121_v7 = vadd.f32 %v114_v5, %v51_v4  ;;  %v187_v8 = vpop.f32.mrb[1].mxu0 }
 0x104   :  { %v117_v9 = vpop.f32.mrb[2].mxu0 }
 0x105   :  { %124 = vst.msk [vmem:[#allocation2] sm:$0xff] %vm48_vm0, %v121_v7  ;;  %v122_v10 = vadd.f32 %v117_v9, %v52_v6  ;;  %v188_v11 = vpop.f32.mrb[3].mxu0 }
 0x107   :  { %125 = vst.msk [vmem:[#allocation2 + $0x8] sm:$0xff] %vm48_vm0, %v122_v10 }
 0x10c   :  { %v129_v13 = vld [vmem:[#allocation2] sm:$0xff] }
 0x10d   :  { %v138_v14 = vadd.f32 %v173_v12, %v129_v13 }
 0x10e   :  { %v130_v15 = vld [vmem:[#allocation2 + $0x8] sm:$0xff] }
 0x10f   :  { %v139_v16 = vadd.f32 %v173_v12, %v130_v15  ;;  %v176_v17 = vpack.c.bf16 %v138_v14, %v138_v14 }
 0x111   :  { %v177_v18 = vpack.c.bf16 %v139_v16, %v139_v16  ;;  %149 = vst.msk [vmem:[#allocation8] sm:$0xf] %vm148_vm3, %v176_v17 }
 0x113   :  { %150 = vst.msk [vmem:[#allocation8 + $0x4] sm:$0xf] %vm148_vm3, %v177_v18 }
 0x114   :  { %254 = shalt.err (!%p251_p6)
}
 0x115   :  { %s255_s15 = scalar_lea.hbm %s353_s3, 128 }
 0x116   :  { %p256_p7 = scmp.ne.s32.totalorder %s353_s3, %s255_s15  ;;  %p259_p8 = scmp.lt.u32.totalorder %s255_s15, %s353_s3 }
 0x118   :  { %p261_p9 = pnand %p259_p8, %p256_p7 }
 0x11a   :  { %264 = shalt.err (!%p261_p9)
}
 0x11b   :  { %162 = dma.vmem_to_hbm [thread:$0]  %s157_s12, 128, %s353_s3, [#allocation5], %s272_s22, %s272_s22, %s273_s23  }
 0x11c   :  { %269 = dma.done.wait [#allocation5], 128  }
 0x11d   :  { %270 = vsyncadd [#allocation5], 4294967168 }
 0x11e   :  { %166 = vsyncpa [#allocation4], 1 }
 0x11f   :  { %167 = vsyncpa [#allocation7], 1 }
 0x120   :  { %168 = vsyncpa [#allocation5], 1 }

</bundles_post_ra>
